<compile_context>
chip_gen: v7x
topology: tpu7x:2x2x1
jax: 0.10.0
libtpu: 0.0.40
codegen_flags: <defaults>
</compile_context>

<pallas_src>
import jax
import jax.numpy as jnp
import numpy as np
from jax.experimental import pallas as pl
from jax.experimental.pallas import tpu as pltpu


def _round_up(x, m):
    return (x + m - 1) // m * m


# ----------------------------------------------------------------------------
# Pallas kernel: fused im2col-matmul + bias (the transposed-conv hot path).
# One big MXU matmul per grid step, one lane-dense (128-wide) store.
# ----------------------------------------------------------------------------
def _im2col_matmul_bias_kernel(a_ref, w_ref, b_ref, o_ref):
    acc = jnp.dot(a_ref[...], w_ref[...], preferred_element_type=jnp.float32)
    o_ref[...] = (acc + b_ref[...]).astype(o_ref.dtype)


def matmul_bias_pallas(a, w, b, *, tm, tn):
    # a: (M_pad, Kd_pad)  im2col patches (zero-padded rows/cols)
    # w: (Kd_pad, Np)     flipped HWIO weight, reshaped + zero-padded
    # b: (1, Np)          bias (zero-padded)
    M_pad, Kd = a.shape
    _, Np = w.shape
    num_m = M_pad // tm
    num_n = Np // tn
    return pl.pallas_call(
        _im2col_matmul_bias_kernel,
        out_shape=jax.ShapeDtypeStruct((M_pad, Np), jnp.float32),
        grid_spec=pltpu.PrefetchScalarGridSpec(
            num_scalar_prefetch=0,
            # M varies fastest -> weight/bias block index is constant across
            # the inner loop, so it stays resident in VMEM (no re-DMA).
            grid=(num_n, num_m),
            in_specs=[
                pl.BlockSpec((tm, Kd), lambda n, m: (m, 0)),
                pl.BlockSpec((Kd, tn), lambda n, m: (0, n)),
                pl.BlockSpec((1, tn), lambda n, m: (0, n)),
            ],
            out_specs=pl.BlockSpec((tm, tn), lambda n, m: (m, n)),
        ),
        compiler_params=pltpu.CompilerParams(
            dimension_semantics=("parallel", "parallel")),
    )(a, w, b)


# ----------------------------------------------------------------------------
# Module-equivalent wrapper (parameter setup + reshapes are plain JAX glue)
# ----------------------------------------------------------------------------
def rotate_p4(w, r):
    # TODO(synk): rotate_p4 is not included in the provided snippet; standard
    # p4 filter rotation (r * 90deg spatial rotation + cyclic shift of the
    # rotation-channel axis) is assumed.
    return jnp.rot90(jnp.roll(w, shift=r, axis=2), k=r, axes=(3, 4))


class GefeTrConv2d:
    def __init__(self, in_channels, out_channels, kernel_size, stride=1,
                 padding=0, bias=True, key=None):
        self.in_channels = in_channels
        self.out_channels = out_channels
        self.kernel_size = kernel_size
        self.stride = stride
        self.padding = padding
        std = 1.0 / (out_channels * in_channels) ** 0.5
        key = jax.random.PRNGKey(0) if key is None else key
        self.weight = std * jax.random.normal(
            key, (out_channels, in_channels, 4, kernel_size, kernel_size),
            dtype=jnp.float32)
        self.bias = jnp.zeros((out_channels,), jnp.float32) if bias else None
        # Build the matmul-ready weight ONCE (hoisted off the forward path).
        # NOTE: if self.weight / self.bias are mutated later, rebuild this.
        self._w_mat, self._b_mat = self._build_matmul_weight()

    # --- filter construction (mirrors the torch module) ----------------------
    def build_filter(self):
        filt = jnp.stack([rotate_p4(self.weight, i) for i in range(4)], axis=1)
        # filt: (O, 4, I, 4, K, K)
        if self.bias is not None:
            b = jnp.repeat(self.bias[:, None], 4, axis=1)   # (O, 4)
        else:
            b = None
        return filt, b

    def _build_conv_weight(self):
        """HWIO (K, K, Cin, Cout) spatially-flipped weight + flat bias."""
        O, I, K = self.out_channels, self.in_channels, self.kernel_size
        filt, b = self.build_filter()
        # (O*4, I*4, K, K) -> permute -> (Cin, Cout, K, K)  (conv_transpose layout)
        w_t = jnp.transpose(filt.reshape(O * 4, I * 4, K, K), (1, 0, 2, 3))
        # transposed conv == stride-1 correlation with the spatially flipped
        # kernel on the zero-inserted input -> (K, K, Cin, Cout) HWIO
        w_conv = jnp.transpose(w_t[:, :, ::-1, ::-1], (2, 3, 0, 1))
        bias_full = (b.reshape(O * 4) if b is not None
                     else jnp.zeros((O * 4,), jnp.float32))
        return w_conv, bias_full

    def _build_matmul_weight(self):
        O, I, K = self.out_channels, self.in_channels, self.kernel_size
        Cin, Cout = I * 4, O * 4
        w_conv, bias_full = self._build_conv_weight()
        Kd = K * K * Cin
        Kd_pad = _round_up(Kd, 128)          # lane-aligned contraction dim
        Np = _round_up(Cout, 128)            # lane-dense output dim
        # row index = kh*(K*Cin) + kw*Cin + ci  (matches im2col concat order)
        w_mat = w_conv.reshape(Kd, Cout)
        w_mat = jnp.pad(w_mat, ((0, Kd_pad - Kd), (0, Np - Cout)))
        b_mat = jnp.pad(bias_full, (0, Np - Cout)).reshape(1, Np)
        return w_mat.astype(jnp.float32), b_mat.astype(jnp.float32)

    # --- forward --------------------------------------------------------------
    def __call__(self, x):
        O, I, K = self.out_channels, self.in_channels, self.kernel_size
        s, p = self.stride, self.padding
        assert p <= K - 1, "padding > kernel_size - 1 not supported here"
        B, H, W = x.shape[0], x.shape[-2], x.shape[-1]
        Cin, Cout = I * 4, O * 4
        H_out = (H - 1) * s - 2 * p + K
        W_out = (W - 1) * s - 2 * p + K

        x = x.reshape(B, Cin, H, W)                       # matches torch .view
        x_nhwc = jnp.transpose(x, (0, 2, 3, 1)).astype(jnp.float32)

        # zero-insert (lhs dilation by stride) + transposed-conv padding.
        # TODO(synk): stride-phase (sub-pixel) decomposition would avoid
        # DMAing / multiplying the inserted zeros for stride > 1.
        H_up, W_up = (H - 1) * s + 1, (W - 1) * s + 1
        x_up = jnp.zeros((B, H_up, W_up, Cin), jnp.float32)
        x_up = x_up.at[:, ::s, ::s, :].set(x_nhwc)
        pad = K - 1 - p
        x_pad = jnp.pad(x_up, ((0, 0), (pad, pad), (pad, pad), (0, 0)))

        # im2col: (B, H_out, W_out, K*K*Cin); channel order (kh, kw, ci)
        # matches the weight reshape in _build_matmul_weight.
        cols = [x_pad[:, kh:kh + H_out, kw:kw + W_out, :]
                for kh in range(K) for kw in range(K)]
        patches = jnp.concatenate(cols, axis=-1)
        Kd = K * K * Cin
        M = B * H_out * W_out
        a = patches.reshape(M, Kd)

        Kd_pad, Np = self._w_mat.shape
        tm = max(8, min(128, _round_up(M, 8)))
        tn = min(128, Np)
        M_pad = _round_up(M, tm)
        a = jnp.pad(a, ((0, M_pad - M), (0, Kd_pad - Kd)))

        out_flat = matmul_bias_pallas(a, self._w_mat, self._b_mat, tm=tm, tn=tn)
        out = out_flat[:M, :Cout].reshape(B, H_out, W_out, Cout)
        out = jnp.transpose(out, (0, 3, 1, 2))            # NHWC -> NCHW (C = O*4)
        return out.reshape(B, O, 4, H_out, W_out)


# ----------------------------------------------------------------------------
# Pure-JAX reference (XLA conv) for numerical verification
# ----------------------------------------------------------------------------
def ref_forward(mod, x):
    O, I, K = mod.out_channels, mod.in_channels, mod.kernel_size
    s, p = mod.stride, mod.padding
    w_conv, bias_full = mod._build_conv_weight()
    B, H, W = x.shape[0], x.shape[-2], x.shape[-1]
    x2 = x.reshape(B, I * 4, H, W)
    x_nhwc = jnp.transpose(x2, (0, 2, 3, 1))
    out = jax.lax.conv_general_dilated(
        x_nhwc, w_conv, window_strides=(1, 1),
        padding=[(K - 1 - p, K - 1 - p)] * 2,
        lhs_dilation=(s, s),
        dimension_numbers=("NHWC", "HWIO", "NHWC"))
    out = out + bias_full[None, None, None, :]
    out = jnp.transpose(out, (0, 3, 1, 2))
    H_out = (H - 1) * s - 2 * p + K
    W_out = (W - 1) * s - 2 * p + K
    return out.reshape(B, O, 4, H_out, W_out)


if __name__ == "__main__":
    key = jax.random.PRNGKey(0)
    kw_key, kx_key = jax.random.split(key)

    B, in_ch, out_ch, K = 2, 2, 3, 3
    H = W = 8
    stride, padding = 2, 1

    mod = GefeTrConv2d(in_ch, out_ch, K, stride=stride, padding=padding,
                       bias=True, key=kw_key)
    x = jax.random.normal(kx_key, (B, in_ch, 4, H, W), dtype=jnp.float32)

    out = mod(x)
    out = jax.block_until_ready(out)

    ref = ref_forward(mod, x)
    H_out = (H - 1) * stride - 2 * padding + K
    W_out = (W - 1) * stride - 2 * padding + K
    assert out.shape == ref.shape == (B, out_ch, 4, H_out, W_out)
    np.testing.assert_allclose(np.asarray(out), np.asarray(ref),
                               rtol=1e-4, atol=1e-4)
    print("KERNEL_OK")
</pallas_src>

<mosaic_0001>
module attributes {stable_mosaic.version = 11 : i64} {
  func.func @_im2col_matmul_bias_kernel(%arg0: i32, %arg1: i32, %arg2: memref<128x128xf32, #tpu.memory_space<vmem>>, %arg3: memref<128x128xf32, #tpu.memory_space<vmem>>, %arg4: memref<1x128xf32, #tpu.memory_space<vmem>>, %arg5: memref<128x128xf32, #tpu.memory_space<vmem>>) attributes {dimension_semantics = [#tpu.dimension_semantics<parallel>, #tpu.dimension_semantics<parallel>], iteration_bounds = array<i64: 1, 4>, scalar_prefetch = 0 : i64, scratch_operands = 0 : i64, tpu.core_type = #tpu.core_type<tc>, window_params = [{transform_indices = @transform_0, window_bounds = array<i64: 128, 128>}, {transform_indices = @transform_1, window_bounds = array<i64: 128, 128>}, {transform_indices = @transform_2, window_bounds = array<i64: 1, 128>}, {transform_indices = @transform_3, window_bounds = array<i64: 128, 128>}]} {
    %c0 = arith.constant 0 : index
    %c0_0 = arith.constant 0 : index
    %0 = vector.load %arg2[%c0, %c0_0] : memref<128x128xf32, #tpu.memory_space<vmem>>, vector<128x128xf32>
    %c0_1 = arith.constant 0 : index
    %c0_2 = arith.constant 0 : index
    %1 = vector.load %arg3[%c0_1, %c0_2] : memref<128x128xf32, #tpu.memory_space<vmem>>, vector<128x128xf32>
    %cst = arith.constant dense<0.000000e+00> : vector<128x128xf32>
    %2 = tpu.matmul %0, %1, %cst {dimension_numbers = #tpu.dot_dimension_numbers<[1], [0], [0], [1], [0, 0, 1, 1], [], []>} : vector<128x128xf32>, vector<128x128xf32>, vector<128x128xf32> -> vector<128x128xf32>
    %c0_3 = arith.constant 0 : index
    %c0_4 = arith.constant 0 : index
    %3 = vector.load %arg4[%c0_3, %c0_4] : memref<1x128xf32, #tpu.memory_space<vmem>>, vector<1x128xf32>
    %4 = vector.broadcast %3 : vector<1x128xf32> to vector<128x128xf32>
    %5 = arith.addf %2, %4 : vector<128x128xf32>
    %c0_5 = arith.constant 0 : index
    %c0_6 = arith.constant 0 : index
    %6 = vector.load %arg5[%c0_5, %c0_6] : memref<128x128xf32, #tpu.memory_space<vmem>>, vector<128x128xf32>
    tpu.vector_store %arg5[%c0_5, %c0_6], %5 {strides = array<i32>} : memref<128x128xf32, #tpu.memory_space<vmem>>, vector<128x128xf32>,
    return
  }
  func.func @transform_0(%arg0: i32, %arg1: i32) -> (i32, i32) {
    %c0_i32 = arith.constant 0 : i32
    %c0_i32_0 = arith.constant 0 : i32
    return %arg1, %c0_i32 : i32, i32
  }
  func.func @transform_1(%arg0: i32, %arg1: i32) -> (i32, i32) {
    %c0_i32 = arith.constant 0 : i32
    %c0_i32_0 = arith.constant 0 : i32
    return %c0_i32, %arg0 : i32, i32
  }
  func.func @transform_2(%arg0: i32, %arg1: i32) -> (i32, i32) {
    %c0_i32 = arith.constant 0 : i32
    %c0_i32_0 = arith.constant 0 : i32
    return %c0_i32, %arg0 : i32, i32
  }
  func.func @transform_3(%arg0: i32, %arg1: i32) -> (i32, i32) {
    %c0_i32 = arith.constant 0 : i32
    return %arg1, %arg0 : i32, i32
  }
}

</mosaic_0001>

<bundles_post_ra>
// kernel: tpu_custom_call.1
= control target key start
LH: loop header
LB: loop body
LE: loop exit
PB: predicated region body
PF: predicated region fallthrough
CT: control target
= control target key end

     0   :  { %8 = vsyncpa [#allocation3], 0  ;;  %s1237_s0 = inlined_call_operand.hbm [shape: f32[512,128], index: 0, kind: input, shape index: {}]   ;;  %s1238_s1 = inlined_call_operand.hbm [shape: f32[128,128], index: 1, kind: input, shape index: {}]   ;;  %s1239_s2 = inlined_call_operand.vmem [shape: f32[1,128], index: 2, kind: input, shape index: {}]   ;;  %s1240_s3 = inlined_call_operand.hbm [shape: f32[512,128], index: 3, kind: output, shape index: {}]  }
   0x1   :  { %10 = vsyncpa [#allocation3 + $0x1], 0 }
   0x2   :  { %11 = vsyncpa [#allocation6], 0 }
   0x3   :  { %12 = vsyncpa [#allocation4], 0 }
   0x4   :  { %14 = vsyncpa [#allocation4 + $0x1], 0  ;;  %s970_s12 = smov 0   ;;  %s972_s13 = smov 0  }
   0x5   :  { %s974_s14 = smov 0   ;;  %s976_s15 = smov 0  }
   0x6   :  { %s978_s16 = smov 0   ;;  %s980_s17 = smov 0  }
   0x7 LB: > { %s563_s18 = sadd.s32 4294967295, %s941_s17   ;;  %s564_s19 = sadd.s32 4294967294, %s941_s17   ;;  %s941_s17 = sphi %s980_s17, %s20_s17   ;;  %s937_s16 = sphi %s978_s16, %s1263_s16   ;;  %s933_s15 = sphi %s976_s15, %s1262_s15   ;;  %s929_s14 = sphi %s974_s14, %s1261_s14   ;;  %s925_s13 = sphi %s972_s13, %s1260_s13   ;;  %s921_s12 = sphi %s970_s12, %s1259_s12  }
   0x8   : > { %p52_p0 = scmp.ne.s32.totalorder %s925_s13, %s921_s12  ;;  %p1004_p1 = scmp.eq.s32.totalorder %s563_s18, 0 }
   0x9   : > { %p1008_p2 = scmp.eq.s32.totalorder %s563_s18, 3  ;;  %p136_p3 = scmp.eq.s32.totalorder %s564_s19, 3 }
   0xa   : > { %s1245_s20 = scalar_select %p1004_p1, 1, 0 }
   0xb   : > { %s1246_s21 = scalar_select %p1008_p2, 1, 0 }
   0xc   : > { %p1014_p4 = por %p1004_p1, %p52_p0  ;;  %p565_p5 = scmp.ge.s32.totalorder %s941_s17, 1 }
   0xd   : > { %p1019_p6 = por %p136_p3, %p52_p0  ;;  %p143_p7 = scmp.lt.s32.totalorder %s941_s17, 5 }
   0xe   : > { %s1247_s22 = scalar_select %p1014_p4, 1, 0 }
   0xf   : > { %s1248_s23 = scalar_select %p1019_p6, 1, 0 }
  0x10   : > { %p1024_p8 = pnand %p565_p5, %p143_p7  ;;  %s943_s25 = smov [#allocation5]  }
  0x11   : > { %s157_s26 = sshll.u32 %s943_s25, 4  ;;  %s29_s28 = sadd.s32 1, %s937_s16  ;;  %s158_s26 = int_to_ptr.vmem [resolvable:$true] %s157_s26 }
  0x12   : > { %s1249_s24 = scalar_select %p1024_p8, 1, 0 }
  0x13   : > { %p728_p9 = pneg %p1024_p8  ;;  %s797_s4 = scalar_lea.hbm %s1238_s1, 2048 }
  0x14   : > { %p798_p11 = scmp.ne.s32.totalorder %s1238_s1, %s797_s4  ;;  %p804_p3 = scmp.lt.u32.totalorder %s797_s4, %s1238_s1 }
  0x15   : > { %p1032_p10 = pnand %p728_p9, %p1004_p1 }
  0x17   : > { %p799_p12 = pneg %p1032_p10 }
  0x19   : > { %p800_p13 = pnand %p799_p12, %p798_p11 }
  0x1b   : > { %p801_p0 = pneg %p800_p13 }
  0x1d   : > { %p806_p5 = pnand %p804_p3, %p801_p0 }
  0x1f   : > { %809 = shalt.err (!%p806_p5)
}
  0x20   : > { %s810_s9 = scalar_lea.vmem %s158_s26, 2048  ;;  %p818_p1 = scmp.lt.s32.totalorder %s158_s26, %s158_s26 }
  0x21   : > { %p811_p7 = scmp.ne.s32.totalorder %s158_s26, %s810_s9  ;;  %p819_p4 = scmp.lt.s32.totalorder %s810_s9, %s810_s9 }
  0x23   : > { %p813_p9 = pnand %p811_p7, %p799_p12  ;;  %p820_p8 = por %p819_p4, %p818_p1 }
  0x25   : > { %p814_p6 = pneg %p813_p9 }
  0x27   : > { %p821_p2 = pnand %p820_p8, %p814_p6 }
  0x29   : > { %824 = shalt.err (!%p821_p2)
}
  0x2a   : > { %s944_s10 = smov 128   ;;  %s945_s11 = smov 8  }
  0x2b   : > { %731 = dma.hbm_to_vmem [thread:$0]  (!%p1032_p10), %s1238_s1, 2048, %s158_s26, [#allocation6], %s944_s10, %s944_s10, %s945_s11  }
  0x2c   : > { %p30_p1 = scmp.ge.s32.totalorder %s29_s28, 4  ;;  %s39_s25 = sadd.s32 1, %s929_s14 }
  0x2d   : > { %p46_p2 = scmp.ne.s32.totalorder %s929_s14, %s925_s13  ;;  %p47_p4 = scmp.eq.s32.totalorder %s941_s17, 0 }
  0x2e   : > { %s1265_s28 = smov (%p30_p1, %s29_s28), 0  ;;  %p1252_p8 = scmp.ne.s32.totalorder %s1246_s21, 0 }
  0x2f   : > { %p1062_p6 = por %p47_p4, %p46_p2  ;;  %s36_s30 = ssub.s32 %s937_s16, %s1265_s28 }
  0x30   : > { %p1068_p11 = por %p1252_p8, %p46_p2  ;;  %p741_p12 = scmp.lt.s32.totalorder %s941_s17, 4 }
  0x31   : > { %p37_p10 = scmp.eq.s32.totalorder %s36_s30, 0  ;;  %s177_s26 = sand.u32 1, %s929_s14  }
  0x32   : > { %s569_s4 = sshll.u32 %s177_s26, 7  ;;  %s582_s6 = sshll.u32 %s937_s16, 11 }
  0x33   : > { %s1077_s5 = scalar_select %p37_p10, %s929_s14, %s39_s25  }
  0x34   : > { %s1083_s9 = scalar_lea.hbm %s1237_s0, %s582_s6  ;;  %s181_s21 = scalar_lea.vmem [#allocation2], %s569_s4 }
  0x35   : > { %s188_s18 = sshll.u32 %s181_s21, 4  ;;  %p1089_p13 = pnand %p741_p12, %p1062_p6  ;;  %s1085_s18 = int_to_ptr.vmem [resolvable:$true] %s188_s18 }
  0x36   : > { %s1093_s25 = scalar_lea.sflag [#allocation3], %s177_s26  ;;  %s825_s30 = scalar_lea.hbm %s1083_s9, 2048 }
  0x37   : > { %p826_p0 = scmp.ne.s32.totalorder %s1083_s9, %s825_s30  ;;  %p827_p3 = pneg %p1089_p13 }
  0x38   : > { %s830_s29 = scalar_lea.hbm %s1237_s0, 8192  ;;  %p831_p9 = scmp.lt.u32.totalorder %s1083_s9, %s1237_s0 }
  0x39   : > { %p828_p5 = pnand %p827_p3, %p826_p0  ;;  %p832_p1 = scmp.lt.u32.totalorder %s830_s29, %s825_s30 }
  0x3a   : > { %p834_p4 = scmp.lt.u32.totalorder %s825_s30, %s1083_s9 }
  0x3b   : > { %p829_p7 = pneg %p828_p5  ;;  %p833_p2 = por %p832_p1, %p831_p9 }
  0x3d   : > { %p835_p6 = por %p834_p4, %p833_p2 }
  0x3f   : > { %p836_p8 = pnand %p835_p6, %p829_p7 }
  0x41   : > { %839 = shalt.err (!%p836_p8)
}
  0x42   : > { %s840_s26 = scalar_lea.vmem %s1085_s18, 2048  ;;  %s946_s21 = smov [#allocation2]  }
  0x43   : > { %p841_p12 = scmp.ne.s32.totalorder %s1085_s18, %s840_s26  ;;  %s845_s4 = sshll.u32 %s946_s21, 4  ;;  %s846_s4 = int_to_ptr.vmem [resolvable:$false] %s845_s4 }
  0x44   : > { %s847_s6 = scalar_lea.vmem %s846_s4, 4096  ;;  %p848_p5 = scmp.lt.s32.totalorder %s1085_s18, %s846_s4 }
  0x45   : > { %p843_p10 = pnand %p841_p12, %p827_p3  ;;  %p849_p9 = scmp.lt.s32.totalorder %s847_s6, %s840_s26 }
  0x47   : > { %p844_p0 = pneg %p843_p10  ;;  %p850_p1 = por %p849_p9, %p848_p5 }
  0x49   : > { %p851_p2 = pnand %p850_p1, %p844_p0 }
  0x4b   : > { %854 = shalt.err (!%p851_p2)
}
  0x4c   : > { %735 = dma.hbm_to_vmem [thread:$0]  (!%p1089_p13), %s1083_s9, 2048, %s1085_s18, %s1093_s25, %s944_s10, %s944_s10, %s945_s11  }
  0x4d   : > { %p1255_p3 = scmp.ne.s32.totalorder %s1249_s24, 0 }
  0x4e   : > { %s1127_s30 = sand.u32 (!%p1255_p3), 1, %s925_s13   ;;  %p1256_p7 = scmp.ne.s32.totalorder (!%p1255_p3), %s1247_s22, 0 }
  0x4f   : > { %200 = sbr.rel (%p1255_p3) target bundleno = 367 (0x16f), region = 32  ;;  %s573_s29 = sshll.u32 (!%p1255_p3), %s1127_s30, 7 }
  0x50   : > { %s203_s7 = scalar_lea.sflag (!%p1255_p3), [#allocation3], %s1127_s30  ;;  %s1133_s19 = scalar_lea.vmem (!%p1255_p3), [#allocation2], %s573_s29 }
  0x56   : > { %908 = dma.done.wait (%p1256_p7), %s203_s7, 2048  }
  0x57   : > { %910 = vsyncadd (%p1256_p7), %s203_s7, 4294965248  ;;  %p1257_p13 = scmp.ne.s32.totalorder %s1245_s20, 0 }
  0x59   : > { %912 = dma.done.wait (%p1257_p13), [#allocation6], 2048  }
  0x5a   : > { %914 = vsyncadd (%p1257_p13), [#allocation6], 4294965248  ;;  %v257_v0 = vld [vmem:[#allocation5] sm:$0xff]  ;;  %v258_v1 = vld [vmem:[#allocation5 + $0x8] sm:$0xff]  ;;  %s1164_s24 = scalar_lea.vmem [#allocation7], %s573_s29  ;;  %s583_s10 = sshll.u32 %s933_s15, 11 }
  0x5b   : > { %v259_v2 = vld [vmem:[#allocation5 + $0x10] sm:$0xff]  ;;  %v672_v3 = vpack.c.bf16 %v258_v1, %v257_v0  ;;  %v260_v4 = vld [vmem:[#allocation5 + $0x18] sm:$0xff]  ;;  %v261_v6 = vld [vmem:[#allocation5 + $0x20] sm:$0xff]  ;;  %s456_s11 = sshll.u32 %s1164_s24, 4  ;;  %s1183_s15 = scalar_lea.hbm %s1240_s3, %s583_s10  ;;  %s1185_s11 = int_to_ptr.vmem [resolvable:$true] %s456_s11 }
  0x5c   : > { %v676_v5 = vpack.c.bf16 %v260_v4, %v259_v2  ;;  %v262_v7 = vld [vmem:[#allocation5 + $0x28] sm:$0xff]  ;;  %v241_v9 = vld [vmem:[%s1133_s19] sm:$0xff]  ;;  %v263_v11 = vld [vmem:[#allocation5 + $0x30] sm:$0xff]  ;;  %s442_s25 = scalar_lea.sflag [#allocation4], %s1127_s30  ;;  %s855_s8 = scalar_lea.vmem %s1185_s11, 2048 }
  0x5d   : > { %673 = vmatprep.subr.bf16.mxu0 %v672_v3  ;;  %704 = vmatprep.subr.bf16.mxu1 %v672_v3  ;;  %v680_v8 = vpack.c.bf16 %v262_v7, %v261_v6  ;;  %v249_v10 = vld [vmem:[%s1133_s19 + $0x40] sm:$0xff]  ;;  %v264_v12 = vld [vmem:[#allocation5 + $0x38] sm:$0xff]  ;;  %v266_v15 = vld [vmem:[#allocation5 + $0x48] sm:$0xff]  ;;  %p856_p4 = scmp.ne.s32.totalorder %s1185_s11, %s855_s8  ;;  %s947_s26 = smov [#allocation7]  }
  0x5e   : > { %675 = vmatpush3.bf16.msra.mxu0 %v672_v3  ;;  %712 = vmatpush3.bf16.msra.mxu1 %v672_v3  ;;  %v684_v13 = vpack.c.bf16 %v264_v12, %v263_v11  ;;  %v265_v14 = vld [vmem:[#allocation5 + $0x40] sm:$0xff]  ;;  %v267_v17 = vld [vmem:[#allocation5 + $0x50] sm:$0xff]  ;;  %v268_v18 = vld [vmem:[#allocation5 + $0x58] sm:$0xff]  ;;  %s859_s21 = sshll.u32 %s947_s26, 4  ;;  %s860_s21 = int_to_ptr.vmem [resolvable:$false] %s859_s21 }
  0x5f   : > { %677 = vmatprep.subr.bf16.mxu0 %v676_v5  ;;  %705 = vmatprep.subr.bf16.mxu1 %v676_v5  ;;  %v688_v16 = vpack.c.bf16 %v266_v15, %v265_v14  ;;  %v692_v19 = vpack.c.bf16 %v268_v18, %v267_v17  ;;  %v269_v20 = vld [vmem:[#allocation5 + $0x60] sm:$0xff]  ;;  %v270_v21 = vld [vmem:[#allocation5 + $0x68] sm:$0xff]  ;;  %v271_v23 = vld [vmem:[#allocation5 + $0x70] sm:$0xff]  ;;  %p857_p6 = pnand %p856_p4, %p1068_p11  ;;  %s861_s4 = scalar_lea.vmem %s860_s21, 4096 }
  0x60   : > { %648 = vmatprep.mubr.f32.mxu0 %v241_v9  ;;  %660 = vmatprep.mubr.f32.mxu1 %v249_v10  ;;  %v696_v22 = vpack.c.bf16 %v270_v21, %v269_v20  ;;  %v272_v24 = vld [vmem:[#allocation5 + $0x78] sm:$0xff]  ;;  %v242_v26 = vld [vmem:[%s1133_s19 + $0x8] sm:$0xff]  ;;  %v243_v28 = vld [vmem:[%s1133_s19 + $0x10] sm:$0xff]  ;;  %p862_p12 = scmp.lt.s32.totalorder %s1185_s11, %s860_s21  ;;  %p863_p10 = scmp.lt.s32.totalorder %s861_s4, %s855_s8 }
  0x61   : > { %v700_v25 = vpack.c.bf16 %v272_v24, %v271_v23  ;;  %v250_v27 = vld [vmem:[%s1133_s19 + $0x48] sm:$0xff]  ;;  %v251_v29 = vld [vmem:[%s1133_s19 + $0x50] sm:$0xff]  ;;  %v244_v30 = vld [vmem:[%s1133_s19 + $0x18] sm:$0xff]  ;;  %p858_p8 = pneg %p857_p6 }
  0x62   : > { %679 = vmatpush3.bf16.msra.mxu0 %v676_v5  ;;  %713 = vmatpush3.bf16.msra.mxu1 %v676_v5  ;;  %v252_v31 = vld [vmem:[%s1133_s19 + $0x58] sm:$0xff]  ;;  %v245_v32 = vld [vmem:[%s1133_s19 + $0x20] sm:$0xff]  ;;  %v246_v34 = vld [vmem:[%s1133_s19 + $0x28] sm:$0xff]  ;;  %p864_p0 = por %p863_p10, %p862_p12 }
  0x63   : > { %681 = vmatprep.subr.bf16.mxu0 %v680_v8  ;;  %706 = vmatprep.subr.bf16.mxu1 %v680_v8  ;;  %v253_v33 = vld [vmem:[%s1133_s19 + $0x60] sm:$0xff]  ;;  %v254_v35 = vld [vmem:[%s1133_s19 + $0x68] sm:$0xff]  ;;  %v247_v36 = vld [vmem:[%s1133_s19 + $0x30] sm:$0xff] }
  0x64   : > { %v255_v37 = vld [vmem:[%s1133_s19 + $0x70] sm:$0xff]  ;;  %v248_v38 = vld [vmem:[%s1133_s19 + $0x38] sm:$0xff]  ;;  %v576_v40 = vld [vmem:[%s1239_s2] ss:$0 sm:$0xff]  ;;  %p865_p5 = pnand %p864_p0, %p858_p8 }
  0x65   : > { %v256_v39 = vld [vmem:[%s1133_s19 + $0x78] sm:$0xff] }
  0x66   : > { %683 = vmatpush3.bf16.msra.mxu0 %v680_v8  ;;  %714 = vmatpush3.bf16.msra.mxu1 %v680_v8 }
  0x67   : > { %685 = vmatprep.subr.bf16.mxu0 %v684_v13  ;;  %707 = vmatprep.subr.bf16.mxu1 %v684_v13 }
  0x6a   : > { %687 = vmatpush3.bf16.msra.mxu0 %v684_v13  ;;  %715 = vmatpush3.bf16.msra.mxu1 %v684_v13 }
  0x6b   : > { %689 = vmatprep.subr.bf16.mxu0 %v688_v16  ;;  %708 = vmatprep.subr.bf16.mxu1 %v688_v16 }
  0x6e   : > { %691 = vmatpush3.bf16.msra.mxu0 %v688_v16  ;;  %716 = vmatpush3.bf16.msra.mxu1 %v688_v16 }
  0x6f   : > { %693 = vmatprep.subr.bf16.mxu0 %v692_v19  ;;  %709 = vmatprep.subr.bf16.mxu1 %v692_v19 }
  0x72   : > { %695 = vmatpush3.bf16.msra.mxu0 %v692_v19  ;;  %717 = vmatpush3.bf16.msra.mxu1 %v692_v19 }
  0x73   : > { %697 = vmatprep.subr.bf16.mxu0 %v696_v22  ;;  %710 = vmatprep.subr.bf16.mxu1 %v696_v22 }
  0x76   : > { %699 = vmatpush3.bf16.msra.mxu0 %v696_v22  ;;  %718 = vmatpush3.bf16.msra.mxu1 %v696_v22 }
  0x77   : > { %701 = vmatprep.subr.bf16.mxu0 %v700_v25  ;;  %711 = vmatprep.subr.bf16.mxu1 %v700_v25 }
  0x7a   : > { %703 = vmatpush3.bf16.msra.mxu0 %v700_v25  ;;  %719 = vmatpush3.bf16.msra.mxu1 %v700_v25 }
  0x7d   : > { %649 = vmatmul.mubr.f32.vlgmr.msra.gmra.mrb[0].mxu0 %v242_v26  ;;  %661 = vmatmul.mubr.f32.vlgmr.msra.gmra.mrb[0].mxu1 %v250_v27 }
  0x7e   : > { %651 = vmatprep.mubr.f32.mxu0 %v243_v28  ;;  %663 = vmatprep.mubr.f32.mxu1 %v251_v29 }
  0x81   : > { %652 = vmatmul.mubr.f32.gmra.mrb[2].mxu0 %v244_v30  ;;  %664 = vmatmul.mubr.f32.gmra.mrb[2].mxu1 %v252_v31 }
  0x82   : > { %654 = vmatprep.mubr.f32.mxu0 %v245_v32  ;;  %666 = vmatprep.mubr.f32.mxu1 %v253_v33 }
  0x85   : > { %655 = vmatmul.mubr.f32.gmra.mrb[4].mxu0 %v246_v34  ;;  %667 = vmatmul.mubr.f32.gmra.mrb[4].mxu1 %v254_v35 }
  0x86   : > { %657 = vmatprep.mubr.f32.mxu0 %v247_v36  ;;  %669 = vmatprep.mubr.f32.mxu1 %v255_v37 }
  0x89   : > { %658 = vmatmul.mubr.f32.gmra.mrb[6].mxu0 %v248_v38  ;;  %670 = vmatmul.mubr.f32.gmra.mrb[6].mxu1 %v256_v39 }
 0x150   : > { %v650_v41 = vpop.f32.mrb[0].mxu0  ;;  %v662_v42 = vpop.f32.mrb[0].mxu1 }
 0x151   : > { %v352_v43 = vadd.f32 %v650_v41, %v576_v40  ;;  %v392_v44 = vadd.f32 %v662_v42, %v576_v40  ;;  %v346_v45 = vpop.f32.mrb[1].mxu0  ;;  %v386_v46 = vpop.f32.mrb[1].mxu1 }
 0x152   : > { %v347_v47 = vadd.f32 %v576_v40, %v346_v45  ;;  %v387_v48 = vadd.f32 %v576_v40, %v386_v46 }
 0x153   : > { %426 = vst [vmem:[%s1164_s24 + $0x8] sm:$0xff] %v352_v43  ;;  %434 = vst [vmem:[%s1164_s24 + $0x48] sm:$0xff] %v392_v44 }
 0x154   : > { %425 = vst [vmem:[%s1164_s24] sm:$0xff] %v347_v47  ;;  %433 = vst [vmem:[%s1164_s24 + $0x40] sm:$0xff] %v387_v48  ;;  %v653_v49 = vpop.f32.mrb[2].mxu0  ;;  %v665_v50 = vpop.f32.mrb[2].mxu1 }
 0x155   : > { %v362_v51 = vadd.f32 %v653_v49, %v576_v40  ;;  %v402_v52 = vadd.f32 %v665_v50, %v576_v40  ;;  %v356_v53 = vpop.f32.mrb[3].mxu0  ;;  %v396_v54 = vpop.f32.mrb[3].mxu1 }
 0x156   : > { %v357_v55 = vadd.f32 %v576_v40, %v356_v53  ;;  %v397_v56 = vadd.f32 %v576_v40, %v396_v54 }
 0x157   : > { %428 = vst [vmem:[%s1164_s24 + $0x18] sm:$0xff] %v362_v51  ;;  %436 = vst [vmem:[%s1164_s24 + $0x58] sm:$0xff] %v402_v52 }
 0x158   : > { %427 = vst [vmem:[%s1164_s24 + $0x10] sm:$0xff] %v357_v55  ;;  %435 = vst [vmem:[%s1164_s24 + $0x50] sm:$0xff] %v397_v56  ;;  %v656_v57 = vpop.f32.mrb[4].mxu0  ;;  %v668_v58 = vpop.f32.mrb[4].mxu1 }
 0x159   : > { %v372_v59 = vadd.f32 %v656_v57, %v576_v40  ;;  %v412_v60 = vadd.f32 %v668_v58, %v576_v40  ;;  %v366_v61 = vpop.f32.mrb[5].mxu0  ;;  %v406_v62 = vpop.f32.mrb[5].mxu1 }
 0x15a   : > { %v367_v63 = vadd.f32 %v576_v40, %v366_v61  ;;  %v407_v0 = vadd.f32 %v576_v40, %v406_v62 }
 0x15b   : > { %430 = vst [vmem:[%s1164_s24 + $0x28] sm:$0xff] %v372_v59  ;;  %438 = vst [vmem:[%s1164_s24 + $0x68] sm:$0xff] %v412_v60 }
 0x15c   : > { %429 = vst [vmem:[%s1164_s24 + $0x20] sm:$0xff] %v367_v63  ;;  %437 = vst [vmem:[%s1164_s24 + $0x60] sm:$0xff] %v407_v0  ;;  %v659_v1 = vpop.f32.mrb[6].mxu0  ;;  %v671_v2 = vpop.f32.mrb[6].mxu1 }
 0x15d   : > { %v382_v3 = vadd.f32 %v659_v1, %v576_v40  ;;  %v422_v4 = vadd.f32 %v671_v2, %v576_v40  ;;  %v376_v5 = vpop.f32.mrb[7].mxu0  ;;  %v416_v6 = vpop.f32.mrb[7].mxu1 }
 0x15e   : > { %v377_v7 = vadd.f32 %v576_v40, %v376_v5  ;;  %v417_v8 = vadd.f32 %v576_v40, %v416_v6 }
 0x15f   : > { %432 = vst [vmem:[%s1164_s24 + $0x38] sm:$0xff] %v382_v3  ;;  %440 = vst [vmem:[%s1164_s24 + $0x78] sm:$0xff] %v422_v4 }
 0x160   : > { %431 = vst [vmem:[%s1164_s24 + $0x30] sm:$0xff] %v377_v7  ;;  %439 = vst [vmem:[%s1164_s24 + $0x70] sm:$0xff] %v417_v8 }
 0x161   : > { %868 = shalt.err (!%p865_p5)
}
 0x162   : > { %s869_s6 = scalar_lea.hbm %s1183_s15, 2048  ;;  %s873_s19 = scalar_lea.hbm %s1240_s3, 8192 }
 0x163   : > { %p870_p9 = scmp.ne.s32.totalorder %s1183_s15, %s869_s6  ;;  %p874_p3 = scmp.lt.u32.totalorder %s1183_s15, %s1240_s3 }
 0x164   : > { %p875_p7 = scmp.lt.u32.totalorder %s873_s19, %s869_s6  ;;  %p877_p4 = scmp.lt.u32.totalorder %s869_s6, %s1183_s15 }
 0x165   : > { %p871_p1 = pnand %p870_p9, %p1068_p11 }
 0x166   : > { %p876_p13 = por %p875_p7, %p874_p3 }
 0x167   : > { %p872_p2 = pneg %p871_p1 }
 0x168   : > { %p878_p6 = por %p877_p4, %p876_p13 }
 0x16a   : > { %p879_p8 = pnand %p878_p6, %p872_p2 }
 0x16c   : > { %882 = shalt.err (!%p879_p8)
}
 0x16d   : > { %s948_s24 = smov 128   ;;  %s949_s10 = smov 8  }
 0x16e   : > { %726 = dma.vmem_to_hbm [thread:$0]  (%p1068_p11), %s1185_s11, 2048, %s1183_s15, %s442_s25, %s948_s24, %s948_s24, %s949_s10  }
 0x16f PF: > { %p743_p12 = scmp.ge.s32.totalorder %s941_s17, 2  ;;  %s471_s9 = sand.u32 1, %s921_s12  }
 0x170   : > { %p1258_p10 = scmp.ne.s32.totalorder %s1248_s23, 0  ;;  %s472_s18 = scalar_lea.sflag [#allocation4], %s471_s9 }
 0x172   : > { %p737_p0 = pnand %p743_p12, %p1258_p10 }
 0x174   : > { %916 = dma.done.wait (!%p737_p0), %s472_s18, 2048  }
 0x175   : > { %918 = vsyncadd (!%p737_p0), %s472_s18, 4294965248  ;;  %s20_s17 = sadd.s32 1, %s941_s17   ;;  %s1259_s12 = smov %s925_s13 }
 0x176   : > { %p17_p5 = scmp.ge.s32.totalorder %s20_s17, 6   ;;  %s1260_s13 = smov %s929_s14 }
 0x177   : > { %s1261_s14 = smov %s1077_s5  ;;  %s1262_s15 = smov %s937_s16 }
 0x178   : > { %s1263_s16 = smov %s1265_s28  ;;  %19 = sbr.rel (!%p17_p5) target bundleno = 7 (0x7), region = 85 }
 0x17f   :  { %477 = vsyncpa [#allocation3], 1 }
 0x180   :  { %479 = vsyncpa [#allocation3 + $0x1], 1 }
 0x181   :  { %480 = vsyncpa [#allocation6], 1 }
 0x182   :  { %481 = vsyncpa [#allocation4], 1 }
 0x183   :  { %483 = vsyncpa [#allocation4 + $0x1], 1 }

</bundles_post_ra>
